<compile_context>
chip_gen: v7x
topology: tpu7x:2x2x1
jax: 0.10.0
libtpu: 0.0.40
codegen_flags: <defaults>
</compile_context>

<pallas_src>
import functools

import jax
import jax.numpy as jnp
from jax import lax
from jax.experimental import pallas as pl
from jax.experimental.pallas import tpu as pltpu

LANES = 128
SUBLANES = 8
ALIGN = SUBLANES * LANES          # 1024: kernel prefix alignment
MAX_TILE_ROWS = 8192              # (8192,128) f32 block = 4 MiB per input buffer
CHUNK_ROWS = 256                  # in-tile reduction chunk (32 vregs / operand)
NUM_SHARDS = 2                    # leading parallel axis (v7x megacore; no-op on 1-TC)


def _tile_sums(x_ref, t_ref, *, tile_rows, chunk_rows, valid_rows):
    """Partial sums (p*t, p, t) of one (tile_rows,128) tile, as (8,128) vregs."""

    def chunk_sums(off, nrows):
        x = x_ref[pl.ds(off, nrows), :].astype(jnp.float32)
        t = t_ref[pl.ds(off, nrows), :].astype(jnp.float32)
        p = 0.5 * (jnp.tanh(0.5 * x) + 1.0)          # sigmoid, single EUP push
        if valid_rows is not None:
            # Only the final row-partial block takes this path (pl.when-gated).
            row = off + lax.broadcasted_iota(jnp.int32, (nrows, LANES), 0)
            ok = row < valid_rows
            p = jnp.where(ok, p, 0.0)
            t = jnp.where(ok, t, 0.0)
        p3 = p.reshape(nrows // SUBLANES, SUBLANES, LANES)
        t3 = t.reshape(nrows // SUBLANES, SUBLANES, LANES)
        return (jnp.sum(p3 * t3, axis=0), jnp.sum(p3, axis=0), jnp.sum(t3, axis=0))

    n_chunks = tile_rows // chunk_rows
    rem = tile_rows - n_chunks * chunk_rows

    if n_chunks == 1:
        acc = chunk_sums(0, chunk_rows)
    else:
        def body(c, carry):
            off = pl.multiple_of(c * chunk_rows, chunk_rows)
            d = chunk_sums(off, chunk_rows)
            return tuple(a + b for a, b in zip(carry, d))
        zero = jnp.zeros((SUBLANES, LANES), jnp.float32)
        acc = lax.fori_loop(0, n_chunks, body, (zero, zero, zero),
                            unroll=(n_chunks <= 8))
    if rem:
        d = chunk_sums(n_chunks * chunk_rows, rem)
        acc = tuple(a + b for a, b in zip(acc, d))
    return acc


def _dice_partial_kernel(x_ref, t_ref, pt_ref, p_ref, ts_ref, *,
                         steps_per_shard, total_blocks, grid_blocks,
                         tile_rows, chunk_rows, valid_rows_last):
    i = pl.program_id(1)

    @pl.when(i == 0)
    def _init():
        pt_ref[...] = jnp.zeros_like(pt_ref)
        p_ref[...] = jnp.zeros_like(p_ref)
        ts_ref[...] = jnp.zeros_like(ts_ref)

    gblk = pl.program_id(0) * steps_per_shard + i      # global block index

    def accumulate(valid_rows):
        d_pt, d_p, d_t = _tile_sums(x_ref, t_ref, tile_rows=tile_rows,
                                    chunk_rows=chunk_rows, valid_rows=valid_rows)
        pt_ref[...] += d_pt
        p_ref[...] += d_p
        ts_ref[...] += d_t

    last_partial = valid_rows_last != tile_rows
    full_blocks = total_blocks - 1 if last_partial else total_blocks

    if (grid_blocks == total_blocks) and not last_partial:
        accumulate(None)                      # regular hot path: no predication
    else:
        if full_blocks > 0:
            @pl.when(gblk < full_blocks)
            def _full():
                accumulate(None)
        if last_partial:
            @pl.when(gblk == total_blocks - 1)
            def _last():
                accumulate(valid_rows_last)
        # gblk >= total_blocks: over-coverage duplicate of the (clamped) last
        # block when an odd block count is split over 2 shards -> contributes
        # nothing (skipped).


@functools.partial(jax.jit, static_argnames=("smooth", "eps"))
def dice_loss(output, target, smooth=1.0, eps=1e-7):
    assert output.shape == target.shape
    n = output.size
    x = output.reshape(-1)
    t = target.reshape(-1)

    n_aligned = (n // ALIGN) * ALIGN

    sum_pt = jnp.float32(0.0)
    sum_p = jnp.float32(0.0)
    sum_t = jnp.float32(0.0)

    if n_aligned > 0:
        # Common case (n % 1024 == 0): pure reshape, zero-copy.  Ragged inputs
        # pay one prefix-slice copy (still cheaper than padding both arrays).
        xk = x if n_aligned == n else x[:n_aligned]
        tk = t if n_aligned == n else t[:n_aligned]
        rows = n_aligned // LANES                        # multiple of 8
        tile_rows = min(MAX_TILE_ROWS, rows)
        chunk_rows = min(CHUNK_ROWS, tile_rows)
        total_blocks = pl.cdiv(rows, tile_rows)
        num_shards = NUM_SHARDS if total_blocks >= NUM_SHARDS else 1
        steps_per_shard = pl.cdiv(total_blocks, num_shards)
        grid_blocks = num_shards * steps_per_shard
        valid_rows_last = rows - (total_blocks - 1) * tile_rows

        if grid_blocks == total_blocks:
            def idx(s, i):
                return (s * steps_per_shard + i, 0)
        else:
            # Clamp over-coverage steps onto the last block (skipped in-kernel)
            # so the auto-DMA never indexes past the array.
            def idx(s, i):
                return (jnp.minimum(s * steps_per_shard + i, total_blocks - 1), 0)

        kernel = functools.partial(
            _dice_partial_kernel,
            steps_per_shard=steps_per_shard, total_blocks=total_blocks,
            grid_blocks=grid_blocks, tile_rows=tile_rows,
            chunk_rows=chunk_rows, valid_rows_last=valid_rows_last)

        part = jax.ShapeDtypeStruct((num_shards, SUBLANES, LANES), jnp.float32)
        out_spec = pl.BlockSpec((None, SUBLANES, LANES), lambda s, i: (s, 0, 0))

        cost = pl.CostEstimate(
            flops=7 * n_aligned,
            transcendentals=n_aligned,
            bytes_accessed=n_aligned * (xk.dtype.itemsize + tk.dtype.itemsize)
            + 3 * num_shards * SUBLANES * LANES * 4)

        pt_part, p_part, t_part = pl.pallas_call(
            kernel,
            out_shape=(part, part, part),
            grid_spec=pltpu.PrefetchScalarGridSpec(
                num_scalar_prefetch=0,
                grid=(num_shards, steps_per_shard),
                in_specs=[pl.BlockSpec((tile_rows, LANES), idx),
                          pl.BlockSpec((tile_rows, LANES), idx)],
                out_specs=(out_spec, out_spec, out_spec)),
            compiler_params=pltpu.CompilerParams(
                dimension_semantics=("parallel", "arbitrary"),
                vmem_limit_bytes=32 * 1024 * 1024),
            cost_estimate=cost,
        )(xk.reshape(rows, LANES), tk.reshape(rows, LANES))

        sum_pt = jnp.sum(pt_part)
        sum_p = jnp.sum(p_part)
        sum_t = jnp.sum(t_part)

    if n_aligned != n:                          # sub-1024 tail: plain jnp
        xt = x[n_aligned:].astype(jnp.float32)
        tt = t[n_aligned:].astype(jnp.float32)
        pt_tail = 0.5 * (jnp.tanh(0.5 * xt) + 1.0)
        sum_pt = sum_pt + jnp.sum(pt_tail * tt)
        sum_p = sum_p + jnp.sum(pt_tail)
        sum_t = sum_t + jnp.sum(tt)

    # torch: if sum(target) == 0: output = 1 - output; target = 1 - target
    # (folded analytically so the streaming pass does not need the branch).
    n_f = jnp.float32(n)
    flip = sum_t == 0.0
    s_pt = jnp.where(flip, n_f - sum_p - sum_t + sum_pt, sum_pt)
    s_p = jnp.where(flip, n_f - sum_p, sum_p)
    s_t = jnp.where(flip, n_f - sum_t, sum_t)
    return 1.0 - (2.0 * s_pt + smooth) / (s_p + s_t + smooth + eps)


def dice_loss_ref(output, target, smooth=1.0, eps=1e-7):
    p = jax.nn.sigmoid(output.astype(jnp.float32)).reshape(-1)
    t = target.astype(jnp.float32).reshape(-1)
    flip = jnp.sum(t) == 0
    p = jnp.where(flip, 1.0 - p, p)
    t = jnp.where(flip, 1.0 - t, t)
    return 1.0 - (2.0 * jnp.sum(p * t) + smooth) / (jnp.sum(p) + jnp.sum(t) + smooth + eps)


if __name__ == "__main__":
    key = jax.random.PRNGKey(0)
    k1, k2 = jax.random.split(key)

    def check(logits, tgt, rtol=1e-5, atol=1e-5):
        out = dice_loss(logits, tgt)
        jax.block_until_ready(out)
        ref = dice_loss_ref(logits, tgt)
        assert jnp.allclose(out, ref, rtol=rtol, atol=atol), (out, ref)

    # Small NCHW inputs consistent with the module's forward (n = 2048, aligned).
    shape = (2, 4, 16, 16)
    logits = jax.random.normal(k1, shape, dtype=jnp.float32)
    target = (jax.random.uniform(k2, shape) > 0.5).astype(jnp.float32)
    check(logits, target)

    # All-zero target exercises the flip branch.
    check(logits, jnp.zeros(shape, jnp.float32))

    # Tiny ragged size (< 1024 elements): pure jnp tail path.
    shape_r = (2, 3, 7, 5)
    check(jax.random.normal(k1, shape_r, dtype=jnp.float32),
          (jax.random.uniform(k2, shape_r) > 0.5).astype(jnp.float32))

    # Larger ragged size: multi-block grid, 2-way shard split with an odd block
    # count (over-coverage step), row-masked last block and a sub-1024 tail.
    shape_b = (2, 8, 364, 364)
    logits_b = jax.random.normal(k1, shape_b, dtype=jnp.float32)
    target_b = (jax.random.uniform(k2, shape_b) > 0.5).astype(jnp.float32)
    check(logits_b, target_b, rtol=1e-4, atol=1e-5)

    print("KERNEL_OK")
</pallas_src>

<mosaic_0001>
module attributes {stable_mosaic.version = 11 : i64} {
  func.func @_dice_partial_kernel(%arg0: i32, %arg1: i32, %arg2: memref<16x128xf32, #tpu.memory_space<vmem>>, %arg3: memref<16x128xf32, #tpu.memory_space<vmem>>, %arg4: memref<1x8x128xf32, #tpu.memory_space<vmem>>, %arg5: memref<1x8x128xf32, #tpu.memory_space<vmem>>, %arg6: memref<1x8x128xf32, #tpu.memory_space<vmem>>) attributes {dimension_semantics = [#tpu.dimension_semantics<parallel>, #tpu.dimension_semantics<arbitrary>], iteration_bounds = array<i64: 1, 1>, scalar_prefetch = 0 : i64, scratch_operands = 0 : i64, tpu.core_type = #tpu.core_type<tc>, window_params = [{transform_indices = @transform_0, window_bounds = array<i64: 16, 128>}, {transform_indices = @transform_1, window_bounds = array<i64: 16, 128>}, {transform_indices = @transform_2, window_bounds = array<i64: 1, 8, 128>}, {transform_indices = @transform_3, window_bounds = array<i64: 1, 8, 128>}, {transform_indices = @transform_4, window_bounds = array<i64: 1, 8, 128>}]} {
    %c0_i32 = arith.constant 0 : i32
    %0 = arith.cmpi eq, %arg1, %c0_i32 : i32
    %1 = arith.extui %0 : i1 to i32
    %c0_i32_0 = arith.constant 0 : i32
    %2 = arith.cmpi ne, %1, %c0_i32_0 : i32
    scf.if %2 {
      %cst_27 = arith.constant 0.000000e+00 : f32
      %36 = vector.broadcast %cst_27 : f32 to vector<8x128xf32>
      %c0_28 = arith.constant 0 : index
      %c0_29 = arith.constant 0 : index
      %c0_30 = arith.constant 0 : index
      %37 = vector.load %arg4[%c0_28, %c0_29, %c0_30] : memref<1x8x128xf32, #tpu.memory_space<vmem>>, vector<1x8x128xf32>
      %38 = vector.shape_cast %37 : vector<1x8x128xf32> to vector<8x128xf32>
      %39 = vector.shape_cast %36 : vector<8x128xf32> to vector<1x8x128xf32>
      tpu.vector_store %arg4[%c0_28, %c0_29, %c0_30], %39 {strides = array<i32>} : memref<1x8x128xf32, #tpu.memory_space<vmem>>, vector<1x8x128xf32>,
      %cst_31 = arith.constant 0.000000e+00 : f32
      %40 = vector.broadcast %cst_31 : f32 to vector<8x128xf32>
      %c0_32 = arith.constant 0 : index
      %c0_33 = arith.constant 0 : index
      %c0_34 = arith.constant 0 : index
      %41 = vector.load %arg5[%c0_32, %c0_33, %c0_34] : memref<1x8x128xf32, #tpu.memory_space<vmem>>, vector<1x8x128xf32>
      %42 = vector.shape_cast %41 : vector<1x8x128xf32> to vector<8x128xf32>
      %43 = vector.shape_cast %40 : vector<8x128xf32> to vector<1x8x128xf32>
      tpu.vector_store %arg5[%c0_32, %c0_33, %c0_34], %43 {strides = array<i32>} : memref<1x8x128xf32, #tpu.memory_space<vmem>>, vector<1x8x128xf32>,
      %cst_35 = arith.constant 0.000000e+00 : f32
      %44 = vector.broadcast %cst_35 : f32 to vector<8x128xf32>
      %c0_36 = arith.constant 0 : index
      %c0_37 = arith.constant 0 : index
      %c0_38 = arith.constant 0 : index
      %45 = vector.load %arg6[%c0_36, %c0_37, %c0_38] : memref<1x8x128xf32, #tpu.memory_space<vmem>>, vector<1x8x128xf32>
      %46 = vector.shape_cast %45 : vector<1x8x128xf32> to vector<8x128xf32>
      %47 = vector.shape_cast %44 : vector<8x128xf32> to vector<1x8x128xf32>
      tpu.vector_store %arg6[%c0_36, %c0_37, %c0_38], %47 {strides = array<i32>} : memref<1x8x128xf32, #tpu.memory_space<vmem>>, vector<1x8x128xf32>,
    } else {
    }
    %c0 = arith.constant 0 : index
    %c0_1 = arith.constant 0 : index
    %3 = vector.load %arg2[%c0, %c0_1] : memref<16x128xf32, #tpu.memory_space<vmem>>, vector<16x128xf32>
    %c0_2 = arith.constant 0 : index
    %c0_3 = arith.constant 0 : index
    %4 = vector.load %arg3[%c0_2, %c0_3] : memref<16x128xf32, #tpu.memory_space<vmem>>, vector<16x128xf32>
    %cst = arith.constant 5.000000e-01 : f32
    %5 = vector.broadcast %cst : f32 to vector<16x128xf32>
    %6 = arith.mulf %5, %3 : vector<16x128xf32>
    %7 = math.tanh %6 : vector<16x128xf32>
    %cst_4 = arith.constant 1.000000e+00 : f32
    %8 = vector.broadcast %cst_4 : f32 to vector<16x128xf32>
    %9 = arith.addf %7, %8 : vector<16x128xf32>
    %cst_5 = arith.constant 5.000000e-01 : f32
    %10 = vector.broadcast %cst_5 : f32 to vector<16x128xf32>
    %11 = arith.mulf %10, %9 : vector<16x128xf32>
    %12 = vector.shape_cast %11 : vector<16x128xf32> to vector<2x8x128xf32>
    %13 = vector.shape_cast %4 : vector<16x128xf32> to vector<2x8x128xf32>
    %14 = arith.mulf %12, %13 : vector<2x8x128xf32>
    %cst_6 = arith.constant dense<0.000000e+00> : vector<8x128xf32>
    %15 = vector.multi_reduction <add>, %14, %cst_6 [0] : vector<2x8x128xf32> to vector<8x128xf32>
    %cst_7 = arith.constant dense<0.000000e+00> : vector<8x128xf32>
    %16 = vector.multi_reduction <add>, %12, %cst_7 [0] : vector<2x8x128xf32> to vector<8x128xf32>
    %cst_8 = arith.constant dense<0.000000e+00> : vector<8x128xf32>
    %17 = vector.multi_reduction <add>, %13, %cst_8 [0] : vector<2x8x128xf32> to vector<8x128xf32>
    %c0_9 = arith.constant 0 : index
    %c0_10 = arith.constant 0 : index
    %c0_11 = arith.constant 0 : index
    %18 = vector.load %arg4[%c0_9, %c0_10, %c0_11] : memref<1x8x128xf32, #tpu.memory_space<vmem>>, vector<1x8x128xf32>
    %19 = vector.shape_cast %18 : vector<1x8x128xf32> to vector<8x128xf32>
    %20 = arith.addf %19, %15 : vector<8x128xf32>
    %c0_12 = arith.constant 0 : index
    %c0_13 = arith.constant 0 : index
    %c0_14 = arith.constant 0 : index
    %21 = vector.load %arg4[%c0_12, %c0_13, %c0_14] : memref<1x8x128xf32, #tpu.memory_space<vmem>>, vector<1x8x128xf32>
    %22 = vector.shape_cast %21 : vector<1x8x128xf32> to vector<8x128xf32>
    %23 = vector.shape_cast %20 : vector<8x128xf32> to vector<1x8x128xf32>
    tpu.vector_store %arg4[%c0_12, %c0_13, %c0_14], %23 {strides = array<i32>} : memref<1x8x128xf32, #tpu.memory_space<vmem>>, vector<1x8x128xf32>,
    %c0_15 = arith.constant 0 : index
    %c0_16 = arith.constant 0 : index
    %c0_17 = arith.constant 0 : index
    %24 = vector.load %arg5[%c0_15, %c0_16, %c0_17] : memref<1x8x128xf32, #tpu.memory_space<vmem>>, vector<1x8x128xf32>
    %25 = vector.shape_cast %24 : vector<1x8x128xf32> to vector<8x128xf32>
    %26 = arith.addf %25, %16 : vector<8x128xf32>
    %c0_18 = arith.constant 0 : index
    %c0_19 = arith.constant 0 : index
    %c0_20 = arith.constant 0 : index
    %27 = vector.load %arg5[%c0_18, %c0_19, %c0_20] : memref<1x8x128xf32, #tpu.memory_space<vmem>>, vector<1x8x128xf32>
    %28 = vector.shape_cast %27 : vector<1x8x128xf32> to vector<8x128xf32>
    %29 = vector.shape_cast %26 : vector<8x128xf32> to vector<1x8x128xf32>
    tpu.vector_store %arg5[%c0_18, %c0_19, %c0_20], %29 {strides = array<i32>} : memref<1x8x128xf32, #tpu.memory_space<vmem>>, vector<1x8x128xf32>,
    %c0_21 = arith.constant 0 : index
    %c0_22 = arith.constant 0 : index
    %c0_23 = arith.constant 0 : index
    %30 = vector.load %arg6[%c0_21, %c0_22, %c0_23] : memref<1x8x128xf32, #tpu.memory_space<vmem>>, vector<1x8x128xf32>
    %31 = vector.shape_cast %30 : vector<1x8x128xf32> to vector<8x128xf32>
    %32 = arith.addf %31, %17 : vector<8x128xf32>
    %c0_24 = arith.constant 0 : index
    %c0_25 = arith.constant 0 : index
    %c0_26 = arith.constant 0 : index
    %33 = vector.load %arg6[%c0_24, %c0_25, %c0_26] : memref<1x8x128xf32, #tpu.memory_space<vmem>>, vector<1x8x128xf32>
    %34 = vector.shape_cast %33 : vector<1x8x128xf32> to vector<8x128xf32>
    %35 = vector.shape_cast %32 : vector<8x128xf32> to vector<1x8x128xf32>
    tpu.vector_store %arg6[%c0_24, %c0_25, %c0_26], %35 {strides = array<i32>} : memref<1x8x128xf32, #tpu.memory_space<vmem>>, vector<1x8x128xf32>,
    return
  }
  func.func @transform_0(%arg0: i32, %arg1: i32) -> (i32, i32) {
    %c1_i32 = arith.constant 1 : i32
    %0 = arith.muli %arg0, %c1_i32 : i32
    %1 = arith.addi %0, %arg1 : i32
    %c0_i32 = arith.constant 0 : i32
    %c0_i32_0 = arith.constant 0 : i32
    return %1, %c0_i32 : i32, i32
  }
  func.func @transform_1(%arg0: i32, %arg1: i32) -> (i32, i32) {
    %c1_i32 = arith.constant 1 : i32
    %0 = arith.muli %arg0, %c1_i32 : i32
    %1 = arith.addi %0, %arg1 : i32
    %c0_i32 = arith.constant 0 : i32
    %c0_i32_0 = arith.constant 0 : i32
    return %1, %c0_i32 : i32, i32
  }
  func.func @transform_2(%arg0: i32, %arg1: i32) -> (i32, i32, i32) {
    %c0_i32 = arith.constant 0 : i32
    %c0_i32_0 = arith.constant 0 : i32
    %c0_i32_1 = arith.constant 0 : i32
    return %arg0, %c0_i32, %c0_i32_0 : i32, i32, i32
  }
  func.func @transform_3(%arg0: i32, %arg1: i32) -> (i32, i32, i32) {
    %c0_i32 = arith.constant 0 : i32
    %c0_i32_0 = arith.constant 0 : i32
    %c0_i32_1 = arith.constant 0 : i32
    return %arg0, %c0_i32, %c0_i32_0 : i32, i32, i32
  }
  func.func @transform_4(%arg0: i32, %arg1: i32) -> (i32, i32, i32) {
    %c0_i32 = arith.constant 0 : i32
    %c0_i32_0 = arith.constant 0 : i32
    %c0_i32_1 = arith.constant 0 : i32
    return %arg0, %c0_i32, %c0_i32_0 : i32, i32, i32
  }
}

</mosaic_0001>

<bundles_post_ra>
// kernel: dice_loss.1
= control target key start
LH: loop header
LB: loop body
LE: loop exit
PB: predicated region body
PF: predicated region fallthrough
CT: control target
= control target key end

     0   :  { %s166_s0 = inlined_call_operand.vmem [shape: f32[16,128], index: 0, kind: input, shape index: {}]   ;;  %s167_s1 = inlined_call_operand.vmem [shape: f32[16,128], index: 1, kind: input, shape index: {}]   ;;  %s168_s4 = inlined_call_operand.vmem [shape: f32[1,8,128], index: 4, kind: output, shape index: {2}]   ;;  %s169_s3 = inlined_call_operand.vmem [shape: f32[1,8,128], index: 3, kind: output, shape index: {1}]   ;;  %s170_s2 = inlined_call_operand.vmem [shape: f32[1,8,128], index: 2, kind: output, shape index: {0}]  }
   0x1   :  { %v65_v0 = vld [vmem:[%s166_s0] sm:$0xff]  ;;  %v66_v1 = vld [vmem:[%s166_s0 + $0x8] sm:$0xff] }
   0x2   :  { %v67_v2 = vld [vmem:[%s167_s1] sm:$0xff]  ;;  %v68_v3 = vld [vmem:[%s167_s1 + $0x8] sm:$0xff]  ;;  %v69_v4 = vmul.f32 0.5, %v65_v0  ;;  %v70_v5 = vmul.f32 0.5, %v66_v1 }
   0x3   :  { %v81_v6 = vadd.f32 %v68_v3, %v67_v2 }
   0x4   :  { %116 = vtanh.f32 %v69_v4 }
   0x5   :  { %118 = vtanh.f32 %v70_v5  ;;  %90 = vst [vmem:[%s168_s4] sm:$0xff] %v81_v6 }
   0xe   :  { %v117_v7 = vpop.eup %116 }
   0xf   :  { %v119_v8 = vpop.eup %118  ;;  %v73_v9 = vadd.f32 1.0, %v117_v7 }
  0x10   :  { %v74_v10 = vadd.f32 1.0, %v119_v8 }
  0x11   :  { %v75_v11 = vmul.f32 0.5, %v73_v9 }
  0x12   :  { %v76_v12 = vmul.f32 0.5, %v74_v10 }
  0x13   :  { %v77_v13 = vmul.f32 %v75_v11, %v67_v2 }
  0x14   :  { %v78_v14 = vmul.f32 %v76_v12, %v68_v3  ;;  %v80_v15 = vadd.f32 %v76_v12, %v75_v11 }
  0x16   :  { %v79_v16 = vadd.f32 %v78_v14, %v77_v13  ;;  %87 = vst [vmem:[%s169_s3] sm:$0xff] %v80_v15 }
  0x18   :  { %84 = vst [vmem:[%s170_s2] sm:$0xff] %v79_v16 }

</bundles_post_ra>
